<compile_context>
chip_gen: v6e
topology: v6e:2x2x1
jax: 0.10.0
libtpu: 0.0.40
codegen_flags: <defaults>
</compile_context>

<pallas_src>
import jax
import jax.numpy as jnp
from jax.experimental import pallas as pl
from jax.experimental.pallas import tpu as pltpu


def _round_up(x, m):
    return ((x + m - 1) // m) * m


def _decoder_kernel(a1_ref, a2_ref,              # PReLU alphas (SMEM scalars)
                    x_ref,                       # (tm, r) batch tile
                    w1_ref, b1_ref,              # (2h, r),      (1, 2h)
                    w2_ref, b2_ref,              # (h, 2h),      (1, h)
                    w3_ref, b3_ref,              # (nout_p, h),  (1, nout_p)
                    o_ref):                      # (tm, nout_p)
    def linear_t(h, w_ref, b_ref):
        # h @ W.T + b with W kept in PyTorch (out, in) layout: contract the
        # feature dim of h against dim 1 of W (trans_b on the MXU), f32 acc.
        acc = jax.lax.dot_general(
            h, w_ref[...],
            dimension_numbers=(((1,), (1,)), ((), ())),
            preferred_element_type=jnp.float32)
        return acc + b_ref[...]

    a1 = a1_ref[0]
    a2 = a2_ref[0]

    h = linear_t(x_ref[...], w1_ref, b1_ref)
    h = jnp.where(h > 0, h, a1 * h)                        # PReLU (shared alpha)
    h = linear_t(h.astype(w2_ref.dtype), w2_ref, b2_ref)
    h = jnp.where(h > 0, h, a2 * h)                        # PReLU (shared alpha)
    out = linear_t(h.astype(w3_ref.dtype), w3_ref, b3_ref)
    o_ref[...] = out.astype(o_ref.dtype)


def adv_celebset_forward(x, params, y=None, *, block_batch=128):
    """Fused forward of AdvCelebSET.decoder.

    x      : (B, r)
    params : dict with PyTorch-layout tensors:
             w1 (2*hdl, r), b1 (2*hdl,), a1 (1,)   [PReLU weight]
             w2 (hdl, 2*hdl), b2 (hdl,), a2 (1,)
             w3 (nout, hdl), b3 (nout,)
    y is accepted (and ignored) to mirror the PyTorch forward signature.
    """
    del y
    w1, b1, a1 = params["w1"], params["b1"], params["a1"]
    w2, b2, a2 = params["w2"], params["b2"], params["a2"]
    w3, b3 = params["w3"], params["b3"]

    B, r = x.shape
    h1 = w1.shape[0]          # 2*hdl
    h2 = w2.shape[0]          # hdl
    nout = w3.shape[0]

    # --- batch tiling --------------------------------------------------------
    tm = min(block_batch, _round_up(B, 8))
    pB = _round_up(B, tm)
    if pB != B:
        x = jnp.pad(x, ((0, pB - B), (0, 0)))

    # --- lane-dense output: pad nout to a multiple of 128 --------------------
    nout_p = _round_up(nout, 128)
    if nout_p != nout:
        w3 = jnp.pad(w3, ((0, nout_p - nout), (0, 0)))
        b3 = jnp.pad(b3, (0, nout_p - nout))

    b1_2d = b1.reshape(1, h1)
    b2_2d = b2.reshape(1, h2)
    b3_2d = b3.reshape(1, nout_p)
    a1_s = jnp.asarray(a1, jnp.float32).reshape((1,))
    a2_s = jnp.asarray(a2, jnp.float32).reshape((1,))

    out_p = pl.pallas_call(
        _decoder_kernel,
        out_shape=jax.ShapeDtypeStruct((pB, nout_p), x.dtype),
        grid_spec=pltpu.PrefetchScalarGridSpec(
            num_scalar_prefetch=0,
            grid=(pB // tm,),
            in_specs=[
                pl.BlockSpec(memory_space=pltpu.MemorySpace.SMEM),   # a1 scalar
                pl.BlockSpec(memory_space=pltpu.MemorySpace.SMEM),   # a2 scalar
                pl.BlockSpec((tm, r), lambda i: (i, 0)),             # x tile
                pl.BlockSpec((h1, r), lambda i: (0, 0)),             # w1 (resident)
                pl.BlockSpec((1, h1), lambda i: (0, 0)),             # b1
                pl.BlockSpec((h2, h1), lambda i: (0, 0)),            # w2 (resident)
                pl.BlockSpec((1, h2), lambda i: (0, 0)),             # b2
                pl.BlockSpec((nout_p, h2), lambda i: (0, 0)),        # w3 (resident, padded)
                pl.BlockSpec((1, nout_p), lambda i: (0, 0)),         # b3 (padded)
            ],
            out_specs=pl.BlockSpec((tm, nout_p), lambda i: (i, 0)),
        ),
        compiler_params=pltpu.CompilerParams(
            # single batch axis; "parallel" lets v7x shard tiles across both TCs
            dimension_semantics=("parallel",)),
    )(a1_s, a2_s, x, w1, b1_2d, w2, b2_2d, w3, b3_2d)

    return out_p[:B, :nout]


if __name__ == "__main__":
    # Small shapes consistent with AdvCelebSET(nout, r, hdl)
    B, r, hdl, nout = 8, 32, 32, 16

    key = jax.random.PRNGKey(0)
    ks = jax.random.split(key, 7)

    x = jax.random.normal(ks[0], (B, r), dtype=jnp.float32)
    # PyTorch layouts: Linear.weight is (out_features, in_features)
    w1 = jax.random.normal(ks[1], (2 * hdl, r), jnp.float32) * 0.1
    b1 = jax.random.normal(ks[2], (2 * hdl,), jnp.float32) * 0.1
    w2 = jax.random.normal(ks[3], (hdl, 2 * hdl), jnp.float32) * 0.1
    b2 = jax.random.normal(ks[4], (hdl,), jnp.float32) * 0.1
    w3 = jax.random.normal(ks[5], (nout, hdl), jnp.float32) * 0.1
    b3 = jax.random.normal(ks[6], (nout,), jnp.float32) * 0.1
    a1 = jnp.full((1,), 0.25, jnp.float32)   # nn.PReLU() default init
    a2 = jnp.full((1,), 0.25, jnp.float32)

    params = dict(w1=w1, b1=b1, a1=a1, w2=w2, b2=b2, a2=a2, w3=w3, b3=b3)

    out = adv_celebset_forward(x, params)
    jax.block_until_ready(out)

    # Pure-JAX reference of the PyTorch decoder
    def prelu(v, a):
        return jnp.where(v > 0, v, a * v)

    h = prelu(x @ w1.T + b1, a1[0])
    h = prelu(h @ w2.T + b2, a2[0])
    ref = h @ w3.T + b3

    assert out.shape == (B, nout)
    assert jnp.allclose(out, ref, atol=1e-5, rtol=1e-5)

    print("KERNEL_OK")
</pallas_src>

<mosaic_0001>
module attributes {stable_mosaic.version = 11 : i64} {
  func.func @_decoder_kernel(%arg0: i32, %arg1: memref<1xf32, #tpu.memory_space<smem>>, %arg2: memref<1xf32, #tpu.memory_space<smem>>, %arg3: memref<8x32xf32, #tpu.memory_space<vmem>>, %arg4: memref<64x32xf32, #tpu.memory_space<vmem>>, %arg5: memref<1x64xf32, #tpu.memory_space<vmem>>, %arg6: memref<32x64xf32, #tpu.memory_space<vmem>>, %arg7: memref<1x32xf32, #tpu.memory_space<vmem>>, %arg8: memref<128x32xf32, #tpu.memory_space<vmem>>, %arg9: memref<1x128xf32, #tpu.memory_space<vmem>>, %arg10: memref<8x128xf32, #tpu.memory_space<vmem>>) attributes {dimension_semantics = [#tpu.dimension_semantics<parallel>], iteration_bounds = array<i64: 1>, scalar_prefetch = 0 : i64, scratch_operands = 0 : i64, tpu.core_type = #tpu.core_type<tc>, window_params = [{transform_indices = @transform_0, window_bounds = array<i64: 1>}, {transform_indices = @transform_1, window_bounds = array<i64: 1>}, {transform_indices = @transform_2, window_bounds = array<i64: 8, 32>}, {pipeline_mode = #tpu.pipeline_mode<synchronous>, transform_indices = @transform_3, window_bounds = array<i64: 64, 32>}, {pipeline_mode = #tpu.pipeline_mode<synchronous>, transform_indices = @transform_4, window_bounds = array<i64: 1, 64>}, {pipeline_mode = #tpu.pipeline_mode<synchronous>, transform_indices = @transform_5, window_bounds = array<i64: 32, 64>}, {pipeline_mode = #tpu.pipeline_mode<synchronous>, transform_indices = @transform_6, window_bounds = array<i64: 1, 32>}, {pipeline_mode = #tpu.pipeline_mode<synchronous>, transform_indices = @transform_7, window_bounds = array<i64: 128, 32>}, {pipeline_mode = #tpu.pipeline_mode<synchronous>, transform_indices = @transform_8, window_bounds = array<i64: 1, 128>}, {transform_indices = @transform_9, window_bounds = array<i64: 8, 128>}]} {
    %c0 = arith.constant 0 : index
    %0 = memref.load %arg1[%c0] : memref<1xf32, #tpu.memory_space<smem>>
    %c0_0 = arith.constant 0 : index
    %1 = memref.load %arg2[%c0_0] : memref<1xf32, #tpu.memory_space<smem>>
    %c0_1 = arith.constant 0 : index
    %c0_2 = arith.constant 0 : index
    %2 = vector.load %arg3[%c0_1, %c0_2] : memref<8x32xf32, #tpu.memory_space<vmem>>, vector<8x32xf32>
    %c0_3 = arith.constant 0 : index
    %c0_4 = arith.constant 0 : index
    %3 = vector.load %arg4[%c0_3, %c0_4] : memref<64x32xf32, #tpu.memory_space<vmem>>, vector<64x32xf32>
    %cst = arith.constant dense<0.000000e+00> : vector<8x64xf32>
    %4 = tpu.matmul %2, %3, %cst {dimension_numbers = #tpu.dot_dimension_numbers<[1], [1], [0], [0], [0, 0, 1, 0], [], []>} : vector<8x32xf32>, vector<64x32xf32>, vector<8x64xf32> -> vector<8x64xf32>
    %c0_5 = arith.constant 0 : index
    %c0_6 = arith.constant 0 : index
    %5 = vector.load %arg5[%c0_5, %c0_6] : memref<1x64xf32, #tpu.memory_space<vmem>>, vector<1x64xf32>
    %6 = vector.broadcast %5 : vector<1x64xf32> to vector<8x64xf32>
    %7 = arith.addf %4, %6 : vector<8x64xf32>
    %cst_7 = arith.constant 0.000000e+00 : f32
    %8 = vector.broadcast %cst_7 : f32 to vector<8x64xf32>
    %9 = arith.cmpf ogt, %7, %8 : vector<8x64xf32>
    %10 = vector.broadcast %0 : f32 to vector<8x64xf32>
    %11 = arith.mulf %10, %7 : vector<8x64xf32>
    %12 = arith.select %9, %7, %11 : vector<8x64xi1>, vector<8x64xf32>
    %c0_8 = arith.constant 0 : index
    %c0_9 = arith.constant 0 : index
    %13 = vector.load %arg6[%c0_8, %c0_9] : memref<32x64xf32, #tpu.memory_space<vmem>>, vector<32x64xf32>
    %cst_10 = arith.constant dense<0.000000e+00> : vector<8x32xf32>
    %14 = tpu.matmul %12, %13, %cst_10 {dimension_numbers = #tpu.dot_dimension_numbers<[1], [1], [0], [0], [0, 0, 1, 0], [], []>} : vector<8x64xf32>, vector<32x64xf32>, vector<8x32xf32> -> vector<8x32xf32>
    %c0_11 = arith.constant 0 : index
    %c0_12 = arith.constant 0 : index
    %15 = vector.load %arg7[%c0_11, %c0_12] : memref<1x32xf32, #tpu.memory_space<vmem>>, vector<1x32xf32>
    %16 = vector.broadcast %15 : vector<1x32xf32> to vector<8x32xf32>
    %17 = arith.addf %14, %16 : vector<8x32xf32>
    %cst_13 = arith.constant 0.000000e+00 : f32
    %18 = vector.broadcast %cst_13 : f32 to vector<8x32xf32>
    %19 = arith.cmpf ogt, %17, %18 : vector<8x32xf32>
    %20 = vector.broadcast %1 : f32 to vector<8x32xf32>
    %21 = arith.mulf %20, %17 : vector<8x32xf32>
    %22 = arith.select %19, %17, %21 : vector<8x32xi1>, vector<8x32xf32>
    %c0_14 = arith.constant 0 : index
    %c0_15 = arith.constant 0 : index
    %23 = vector.load %arg8[%c0_14, %c0_15] : memref<128x32xf32, #tpu.memory_space<vmem>>, vector<128x32xf32>
    %cst_16 = arith.constant dense<0.000000e+00> : vector<8x128xf32>
    %24 = tpu.matmul %22, %23, %cst_16 {dimension_numbers = #tpu.dot_dimension_numbers<[1], [1], [0], [0], [0, 0, 1, 0], [], []>} : vector<8x32xf32>, vector<128x32xf32>, vector<8x128xf32> -> vector<8x128xf32>
    %c0_17 = arith.constant 0 : index
    %c0_18 = arith.constant 0 : index
    %25 = vector.load %arg9[%c0_17, %c0_18] : memref<1x128xf32, #tpu.memory_space<vmem>>, vector<1x128xf32>
    %26 = vector.broadcast %25 : vector<1x128xf32> to vector<8x128xf32>
    %27 = arith.addf %24, %26 : vector<8x128xf32>
    %c0_19 = arith.constant 0 : index
    %c0_20 = arith.constant 0 : index
    %28 = vector.load %arg10[%c0_19, %c0_20] : memref<8x128xf32, #tpu.memory_space<vmem>>, vector<8x128xf32>
    tpu.vector_store %arg10[%c0_19, %c0_20], %27 {strides = array<i32>} : memref<8x128xf32, #tpu.memory_space<vmem>>, vector<8x128xf32>,
    return
  }
  func.func @transform_0(%arg0: i32) -> i32 {
    %c0_i32 = arith.constant 0 : i32
    %c0_i32_0 = arith.constant 0 : i32
    return %c0_i32 : i32
  }
  func.func @transform_1(%arg0: i32) -> i32 {
    %c0_i32 = arith.constant 0 : i32
    %c0_i32_0 = arith.constant 0 : i32
    return %c0_i32 : i32
  }
  func.func @transform_2(%arg0: i32) -> (i32, i32) {
    %c0_i32 = arith.constant 0 : i32
    %c0_i32_0 = arith.constant 0 : i32
    return %arg0, %c0_i32 : i32, i32
  }
  func.func @transform_3(%arg0: i32) -> (i32, i32) {
    %c0_i32 = arith.constant 0 : i32
    %c0_i32_0 = arith.constant 0 : i32
    %c0_i32_1 = arith.constant 0 : i32
    return %c0_i32, %c0_i32_0 : i32, i32
  }
  func.func @transform_4(%arg0: i32) -> (i32, i32) {
    %c0_i32 = arith.constant 0 : i32
    %c0_i32_0 = arith.constant 0 : i32
    %c0_i32_1 = arith.constant 0 : i32
    return %c0_i32, %c0_i32_0 : i32, i32
  }
  func.func @transform_5(%arg0: i32) -> (i32, i32) {
    %c0_i32 = arith.constant 0 : i32
    %c0_i32_0 = arith.constant 0 : i32
    %c0_i32_1 = arith.constant 0 : i32
    return %c0_i32, %c0_i32_0 : i32, i32
  }
  func.func @transform_6(%arg0: i32) -> (i32, i32) {
    %c0_i32 = arith.constant 0 : i32
    %c0_i32_0 = arith.constant 0 : i32
    %c0_i32_1 = arith.constant 0 : i32
    return %c0_i32, %c0_i32_0 : i32, i32
  }
  func.func @transform_7(%arg0: i32) -> (i32, i32) {
    %c0_i32 = arith.constant 0 : i32
    %c0_i32_0 = arith.constant 0 : i32
    %c0_i32_1 = arith.constant 0 : i32
    return %c0_i32, %c0_i32_0 : i32, i32
  }
  func.func @transform_8(%arg0: i32) -> (i32, i32) {
    %c0_i32 = arith.constant 0 : i32
    %c0_i32_0 = arith.constant 0 : i32
    %c0_i32_1 = arith.constant 0 : i32
    return %c0_i32, %c0_i32_0 : i32, i32
  }
  func.func @transform_9(%arg0: i32) -> (i32, i32) {
    %c0_i32 = arith.constant 0 : i32
    %c0_i32_0 = arith.constant 0 : i32
    return %arg0, %c0_i32 : i32, i32
  }
}

</mosaic_0001>

<bundles_post_ra>
// kernel: tpu_custom_call.1
= control target key start
LH: loop header
LB: loop body
LE: loop exit
PB: predicated region body
PF: predicated region fallthrough
CT: control target
= control target key end

     0   :  { %vm53_vm0 = vcmask 261120   ;;  %v570_v1 = vmov 0.0   ;;  %vm571_vm1 = vmmov 0   ;;  %s793_s0 = inlined_call_operand.<no memory space> [shape: f32[1], index: 0, kind: input, shape index: {}]   ;;  %s794_s1 = inlined_call_operand.<no memory space> [shape: f32[1], index: 1, kind: input, shape index: {}]   ;;  %s795_s2 = inlined_call_operand.vmem [shape: f32[8,32], index: 2, kind: input, shape index: {}]   ;;  %s796_s3 = inlined_call_operand.vmem [shape: f32[64,32], index: 3, kind: input, shape index: {}]   ;;  %s797_s4 = inlined_call_operand.vmem [shape: f32[1,64], index: 4, kind: input, shape index: {}]   ;;  %s798_s5 = inlined_call_operand.vmem [shape: f32[32,64], index: 5, kind: input, shape index: {}]   ;;  %s799_s6 = inlined_call_operand.vmem [shape: f32[1,32], index: 6, kind: input, shape index: {}]   ;;  %s800_s7 = inlined_call_operand.vmem [shape: f32[128,32], index: 7, kind: input, shape index: {}]   ;;  %s801_s8 = inlined_call_operand.vmem [shape: f32[1,128], index: 8, kind: input, shape index: {}]   ;;  %s802_s9 = inlined_call_operand.hbm [shape: f32[8,128], index: 9, kind: output, shape index: {}]  }
   0x1   :  { %v45_v0 = vld [vmem:[%s796_s3 + $0x38] sm:$0xff]  ;;  %480 = vmatprep.subr.mxu0 %v570_v1  ;;  %496 = vmatprep.mubr.msk.f32.mxu0 %vm571_vm1, %v570_v1  ;;  %v44_v2 = vld [vmem:[%s796_s3 + $0x30] sm:$0xff] }
   0x2   :  { %481 = vmatpush3.xpose.msk.msra.mxu0 %vm53_vm0, %v45_v0  ;;  %510 = vmatprep.subr.mxu1 %v570_v1 }
   0x3   :  { %482 = vmatprep.subr.mxu0 %v570_v1  ;;  %542 = vmatprep.mubr.msk.f32.mxu1 %vm571_vm1, %v570_v1 }
   0x4   :  { %16 = vsyncpa [#allocation5], 0  ;;  %v43_v3 = vld [vmem:[%s796_s3 + $0x28] sm:$0xff]  ;;  %v42_v4 = vld [vmem:[%s796_s3 + $0x20] sm:$0xff]  ;;  %vm166_vm2 = vcmask 523264   ;;  %v152_v31 = vstv %s793_s0  ;;  %v253_v39 = vstv %s794_s1  ;;  %s572_s26 = smov [#allocation4]  }
   0x5   :  { %v41_v5 = vld [vmem:[%s796_s3 + $0x18] sm:$0xff]  ;;  %v40_v6 = vld [vmem:[%s796_s3 + $0x10] sm:$0xff]  ;;  %v39_v7 = vld [vmem:[%s796_s3 + $0x8] sm:$0xff]  ;;  %s407_s27 = sshll.u32 %s572_s26, 4  ;;  %s408_s27 = int_to_ptr.vmem [resolvable:$true] %s407_s27 }
   0x6   :  { %483 = vmatpush3.xpose.msk.msra.mxu0 %vm53_vm0, %v44_v2  ;;  %v38_v8 = vld [vmem:[%s796_s3] sm:$0xff]  ;;  %v158_v10 = vld [vmem:[%s798_s5 + $0x18] sm:$0xff]  ;;  %v157_v11 = vld [vmem:[%s798_s5 + $0x10] sm:$0xff]  ;;  %p553_p1 = scmp.lt.s32.totalorder %s408_s27, %s408_s27 }
   0x7   :  { %484 = vmatprep.subr.mxu0 %v570_v1  ;;  %v37_v9 = vld [vmem:[%s795_s2] sm:$0xff]  ;;  %v156_v12 = vld [vmem:[%s798_s5 + $0x8] sm:$0xff]  ;;  %v271_v14 = vld [vmem:[%s800_s7 + $0x78] sm:$0xff] }
   0x8   :  { %v155_v13 = vld [vmem:[%s798_s5] sm:$0xff]  ;;  %511 = vmatpush3.xpose.msk.msra.mxu1 %vm53_vm0, %v271_v14  ;;  %v270_v15 = vld [vmem:[%s800_s7 + $0x70] sm:$0xff]  ;;  %v269_v16 = vld [vmem:[%s800_s7 + $0x68] sm:$0xff] }
   0x9   :  { %512 = vmatprep.subr.mxu1 %v570_v1  ;;  %v268_v17 = vld [vmem:[%s800_s7 + $0x60] sm:$0xff]  ;;  %v267_v18 = vld [vmem:[%s800_s7 + $0x58] sm:$0xff]  ;;  %v266_v19 = vld [vmem:[%s800_s7 + $0x50] sm:$0xff] }
   0xa   :  { %485 = vmatpush3.xpose.msk.msra.mxu0 %vm53_vm0, %v43_v3  ;;  %v265_v20 = vld [vmem:[%s800_s7 + $0x48] sm:$0xff]  ;;  %v264_v21 = vld [vmem:[%s800_s7 + $0x40] sm:$0xff]  ;;  %v263_v22 = vld [vmem:[%s800_s7 + $0x38] sm:$0xff] }
   0xb   :  { %486 = vmatprep.subr.mxu0 %v570_v1  ;;  %v262_v23 = vld [vmem:[%s800_s7 + $0x30] sm:$0xff]  ;;  %v261_v24 = vld [vmem:[%s800_s7 + $0x28] sm:$0xff]  ;;  %v260_v25 = vld [vmem:[%s800_s7 + $0x20] sm:$0xff] }
   0xc   :  { %513 = vmatpush3.xpose.msk.msra.mxu1 %vm53_vm0, %v270_v15  ;;  %v259_v26 = vld [vmem:[%s800_s7 + $0x18] sm:$0xff]  ;;  %v258_v27 = vld [vmem:[%s800_s7 + $0x10] sm:$0xff]  ;;  %v257_v28 = vld [vmem:[%s800_s7 + $0x8] sm:$0xff] }
   0xd   :  { %514 = vmatprep.subr.mxu1 %v570_v1  ;;  %v415_v29 = vld [vmem:[%s797_s4] ss:$0 sm:$0xff] }
   0xe   :  { %487 = vmatpush3.xpose.msk.msra.mxu0 %vm53_vm0, %v42_v4  ;;  %v256_v36 = vld [vmem:[%s800_s7] sm:$0xff] }
   0xf   :  { %488 = vmatprep.subr.mxu0 %v570_v1  ;;  %v425_v37 = vld [vmem:[%s799_s6] ss:$0 sm:$0xff]  ;;  %s548_s6 = scalar_lea.vmem %s408_s27, 128 }
  0x10   :  { %515 = vmatpush3.xpose.msk.msra.mxu1 %vm53_vm0, %v269_v16  ;;  %v431_v44 = vld [vmem:[%s801_s8] ss:$0 sm:$0xff]  ;;  %p549_p0 = scmp.ne.s32.totalorder %s408_s27, %s548_s6  ;;  %p554_p2 = scmp.lt.s32.totalorder %s548_s6, %s548_s6 }
  0x11   :  { %516 = vmatprep.subr.mxu1 %v570_v1 }
  0x12   :  { %489 = vmatpush3.xpose.msk.msra.mxu0 %vm53_vm0, %v41_v5  ;;  %p555_p3 = por %p554_p2, %p553_p1 }
  0x13   :  { %490 = vmatprep.subr.mxu0 %v570_v1 }
  0x14   :  { %517 = vmatpush3.xpose.msk.msra.mxu1 %vm53_vm0, %v268_v17  ;;  %p556_p4 = pnand %p555_p3, %p549_p0 }
  0x15   :  { %518 = vmatprep.subr.mxu1 %v570_v1 }
  0x16   :  { %491 = vmatpush3.xpose.msk.msra.mxu0 %vm53_vm0, %v40_v6 }
  0x17   :  { %492 = vmatprep.subr.mxu0 %v570_v1 }
  0x18   :  { %519 = vmatpush3.xpose.msk.msra.mxu1 %vm53_vm0, %v267_v18 }
  0x19   :  { %520 = vmatprep.subr.mxu1 %v570_v1 }
  0x1a   :  { %493 = vmatpush3.xpose.msk.msra.mxu0 %vm53_vm0, %v39_v7 }
  0x1b   :  { %494 = vmatprep.subr.mxu0 %v570_v1 }
  0x1c   :  { %521 = vmatpush3.xpose.msk.msra.mxu1 %vm53_vm0, %v266_v19 }
  0x1d   :  { %522 = vmatprep.subr.mxu1 %v570_v1 }
  0x1e   :  { %495 = vmatpush3.xpose.msk.msra.mxu0 %vm53_vm0, %v38_v8 }
  0x1f   :  { %499 = vmatprep.subr.mxu0 %v570_v1 }
  0x20   :  { %523 = vmatpush3.xpose.msk.msra.mxu1 %vm53_vm0, %v265_v20 }
  0x21   :  { %497 = vmatmul.mubr.msk.f32.vlgmr.msra.gmra.mxu0 %vm53_vm0, %v37_v9  ;;  %524 = vmatprep.subr.mxu1 %v570_v1 }
  0x22   :  { %500 = vmatpush3.xpose.msk.msra.mxu0 %vm166_vm2, %v158_v10  ;;  %507 = vmatprep.mubr.msk.f32.mxu0 %vm571_vm1, %v570_v1 }
  0x23   :  { %501 = vmatprep.subr.mxu0 %v570_v1 }
  0x24   :  { %525 = vmatpush3.xpose.msk.msra.mxu1 %vm53_vm0, %v264_v21 }
  0x25   :  { %526 = vmatprep.subr.mxu1 %v570_v1 }
  0x26   :  { %502 = vmatpush3.xpose.msk.msra.mxu0 %vm166_vm2, %v157_v11 }
  0x27   :  { %503 = vmatprep.subr.mxu0 %v570_v1 }
  0x28   :  { %527 = vmatpush3.xpose.msk.msra.mxu1 %vm53_vm0, %v263_v22 }
  0x29   :  { %528 = vmatprep.subr.mxu1 %v570_v1 }
  0x2a   :  { %504 = vmatpush3.xpose.msk.msra.mxu0 %vm166_vm2, %v156_v12 }
  0x2b   :  { %505 = vmatprep.subr.mxu0 %v570_v1 }
  0x2c   :  { %529 = vmatpush3.xpose.msk.msra.mxu1 %vm53_vm0, %v262_v23 }
  0x2d   :  { %530 = vmatprep.subr.mxu1 %v570_v1 }
  0x2e   :  { %506 = vmatpush3.xpose.msk.msra.mxu0 %vm166_vm2, %v155_v13 }
  0x30   :  { %531 = vmatpush3.xpose.msk.msra.mxu1 %vm53_vm0, %v261_v24 }
  0x31   :  { %532 = vmatprep.subr.mxu1 %v570_v1 }
  0x34   :  { %533 = vmatpush3.xpose.msk.msra.mxu1 %vm53_vm0, %v260_v25 }
  0x35   :  { %534 = vmatprep.subr.mxu1 %v570_v1 }
  0x38   :  { %535 = vmatpush3.xpose.msk.msra.mxu1 %vm53_vm0, %v259_v26 }
  0x39   :  { %536 = vmatprep.subr.mxu1 %v570_v1 }
  0x3c   :  { %537 = vmatpush3.xpose.msk.msra.mxu1 %vm53_vm0, %v258_v27 }
  0x3d   :  { %538 = vmatprep.subr.mxu1 %v570_v1 }
  0x40   :  { %539 = vmatpush3.xpose.msk.msra.mxu1 %vm53_vm0, %v257_v28 }
  0x41   :  { %540 = vmatprep.subr.mxu1 %v570_v1 }
  0x44   :  { %541 = vmatpush3.xpose.msk.msra.mxu1 %vm53_vm0, %v256_v36 }
  0xe1   :  { %v147_v30 = vpop.f32.mrf.mxu0 }
  0xe2   :  { %v148_v32 = vadd.f32 %v415_v29, %v147_v30 }
  0xe3   :  { %v498_v33 = vpop.f32.mrf.mxu0 }
  0xe4   :  { %vm151_vm3 = vcmp.gt.f32.partialorder %v148_v32, 0.0  ;;  %v153_v34 = vmul.f32 %v152_v31, %v148_v32 }
  0xe6   :  { %v154_v35 = vsel %vm151_vm3, %v148_v32, %v153_v34 }
  0xe7   :  { %508 = vmatmul.mubr.msk.f32.vlgmr.msra.gmra.mxu0 %vm166_vm2, %v154_v35 }
 0x1a7   :  { %v248_v38 = vpop.f32.mrf.mxu0 }
 0x1a8   :  { %v249_v40 = vadd.f32 %v425_v37, %v248_v38 }
 0x1a9   :  { %v509_v41 = vpop.f32.mrf.mxu0 }
 0x1aa   :  { %vm252_vm4 = vcmp.gt.f32.partialorder %v249_v40, 0.0  ;;  %v254_v42 = vmul.f32 %v253_v39, %v249_v40 }
 0x1ac   :  { %v255_v43 = vsel %vm252_vm4, %v249_v40, %v254_v42 }
 0x1ad   :  { %543 = vmatmul.mubr.msk.f32.vlgmr.msra.gmra.mxu1 %vm53_vm0, %v255_v43 }
 0x26d   :  { %v396_v45 = vpop.f32.mrf.mxu1 }
 0x26e   :  { %v397_v46 = vadd.f32 %v431_v44, %v396_v45 }
 0x26f   :  { %v544_v47 = vpop.f32.mrf.mxu1 }
 0x270   :  { %400 = vst [vmem:[#allocation4] sm:$0xff] %v397_v46 }
 0x271   :  { %559 = shalt.err (!%p556_p4)
}
 0x272   :  { %410 = dma.vmem_to_hbm [thread:$0]  %s408_s27, 128, %s802_s9, [#allocation5]  }
 0x273   :  { %568 = dma.done.wait [#allocation5], 128  }
 0x274   :  { %569 = vsyncadd [#allocation5], 4294967168 }
 0x275   :  { %414 = vsyncpa [#allocation5], 1 }

</bundles_post_ra>
